<compile_context>
chip_gen: v7x
topology: tpu7x:2x2x1
jax: 0.10.0
libtpu: 0.0.40
codegen_flags: <defaults>
</compile_context>

<pallas_src>
import jax
import jax.numpy as jnp
from jax.experimental import pallas as pl
from jax.experimental.pallas import tpu as pltpu


def _round_up(x, m):
    return ((x + m - 1) // m) * m


# --------------------------------------------------------------------------
# Pallas kernel: fused (hidden @ W_out + b) -> online log_softmax over vocab
# grid = (row_tiles [parallel], phase in {0: reduce, 1: write}, vocab_tiles)
# --------------------------------------------------------------------------
def _logprob_kernel(h_ref, w_ref, b_ref, out_ref, m_ref, l_ref):
    # h_ref : (TM, H)   bf16 tile of flattened target hidden states
    # w_ref : (H,  TN)  bf16 tile of the output projection
    # b_ref : (1,  TN)  f32 bias tile (padded vocab columns hold -1e30)
    # out_ref: (TM, TN) f32 log-probabilities (written in phase 1 only)
    # m_ref / l_ref: (TM, 1) f32 running max / running sum-exp scratch
    phase = pl.program_id(1)
    j = pl.program_id(2)

    logits = jnp.dot(h_ref[...], w_ref[...],
                     preferred_element_type=jnp.float32) + b_ref[...]

    @pl.when(jnp.logical_and(phase == 0, j == 0))
    def _init():
        m_ref[...] = jnp.full(m_ref.shape, -jnp.inf, m_ref.dtype)
        l_ref[...] = jnp.zeros(l_ref.shape, l_ref.dtype)

    @pl.when(phase == 0)
    def _reduce():
        m_prev = m_ref[...]
        m_new = jnp.maximum(m_prev, jnp.max(logits, axis=-1, keepdims=True))
        l_ref[...] = (l_ref[...] * jnp.exp(m_prev - m_new)
                      + jnp.sum(jnp.exp(logits - m_new), axis=-1, keepdims=True))
        m_ref[...] = m_new

    @pl.when(phase == 1)
    def _write():
        out_ref[...] = logits - (m_ref[...] + jnp.log(l_ref[...]))


def vocab_logprobs(hidden, w_out, b_out, *, tile_m=256, tile_n=512):
    """hidden: (N, H), w_out: (H, V), b_out: (V,) -> (N, V) f32 log-probs."""
    N, H = hidden.shape
    V = w_out.shape[1]

    # Clamp tiles for small problems, keep sublane/lane/MXU alignment.
    tile_m = min(tile_m, _round_up(N, 8))
    tile_n = min(tile_n, _round_up(V, 128))
    Np = _round_up(N, tile_m)
    Vp = _round_up(V, tile_n)

    h = hidden.astype(jnp.bfloat16)
    w = w_out.astype(jnp.bfloat16)
    b = b_out.astype(jnp.float32).reshape(1, V)
    if Np != N:
        h = jnp.pad(h, ((0, Np - N), (0, 0)))
    if Vp != V:
        w = jnp.pad(w, ((0, 0), (0, Vp - V)))
        # Large negative bias on padded vocab columns -> exp() ~ 0 in the lse.
        b = jnp.pad(b, ((0, 0), (0, Vp - V)), constant_values=-1e30)

    num_i = Np // tile_m
    num_j = Vp // tile_n
    grid = (num_i, 2, num_j)

    # Advisory cost hint (matmul is recomputed in the write phase).
    flops = 2 * 2 * Np * H * Vp
    transcendentals = 2 * Np * Vp
    bytes_accessed = (2 * Np * H * 2            # h streamed in both phases (bf16)
                      + 2 * num_i * H * Vp * 2  # W streamed per row tile, both phases
                      + Np * Vp * 4             # log-prob output (f32)
                      + Vp * 4)                 # bias

    out = pl.pallas_call(
        _logprob_kernel,
        out_shape=jax.ShapeDtypeStruct((Np, Vp), jnp.float32),
        grid_spec=pltpu.PrefetchScalarGridSpec(
            num_scalar_prefetch=0,
            grid=grid,
            in_specs=[
                pl.BlockSpec((tile_m, H), lambda i, p, j: (i, 0)),
                pl.BlockSpec((H, tile_n), lambda i, p, j: (0, j)),
                pl.BlockSpec((1, tile_n), lambda i, p, j: (0, j)),
            ],
            # Phase 0 pins the output to block (i, 0) and never writes it, so no
            # garbage writeback happens; phase 1 visits (i, j) and writes it.
            out_specs=pl.BlockSpec((tile_m, tile_n), lambda i, p, j: (i, j * p)),
            scratch_shapes=[
                pltpu.VMEM((tile_m, 1), jnp.float32),   # running max
                pltpu.VMEM((tile_m, 1), jnp.float32),   # running sum-exp
            ],
        ),
        compiler_params=pltpu.CompilerParams(
            dimension_semantics=("parallel", "arbitrary", "arbitrary"),
            # Headroom-safe on v7x (64 MiB total VMEM); plenty on v5e/v6e.
            vmem_limit_bytes=48 * 1024 * 1024,
        ),
        cost_estimate=pl.CostEstimate(
            flops=flops,
            transcendentals=transcendentals,
            bytes_accessed=bytes_accessed,
        ),
    )(h, w, b)

    return out[:N, :V]


# --------------------------------------------------------------------------
# Concrete NMT model (parameters initialized deterministically in-script)
# --------------------------------------------------------------------------
class NMTModelPallas:
    def __init__(self, vocab=128, hidden=32, key=jax.random.PRNGKey(0)):
        k1, k2, k3, k4 = jax.random.split(key, 4)
        scale = 1.0 / jnp.sqrt(hidden)
        self.src_emb = jax.random.normal(k1, (vocab, hidden), jnp.float32) * scale
        self.tgt_emb = jax.random.normal(k2, (vocab, hidden), jnp.float32) * scale
        # Projection weight stored in bf16 (halves HBM traffic, 2x MXU rate);
        # accumulation inside the kernel stays f32.
        self.w_out = (jax.random.normal(k3, (hidden, vocab), jnp.float32)
                      * scale).astype(jnp.bfloat16)
        self.b_out = jax.random.normal(k4, (vocab,), jnp.float32) * 0.01
        self.vocab = vocab
        self.hidden = hidden

    def encode(self, src_seq):
        """src_seq: (B, S) int32 -> context (B, H) via mean pooling (JAX glue)."""
        emb = jnp.take(self.src_emb, src_seq, axis=0)          # (B, S, H)
        ctx = jnp.mean(emb, axis=1)                            # (B, H)
        return {"ctx": ctx}

    def forward(self, src_seq, tgt_seq):
        """Return log-probabilities (B, T, V) of the target samples."""
        B, T = tgt_seq.shape
        enc = self.encode(src_seq)
        tgt_h = jnp.take(self.tgt_emb, tgt_seq, axis=0)        # (B, T, H)
        h = tgt_h + enc["ctx"][:, None, :]                     # (B, T, H)
        h_flat = h.reshape(B * T, self.hidden)                 # rows = tokens
        logp = vocab_logprobs(h_flat, self.w_out, self.b_out)  # Pallas hot path
        return logp.reshape(B, T, self.vocab)


# --------------------------------------------------------------------------
if __name__ == "__main__":
    B, S, T, V, H = 2, 8, 8, 128, 32
    key = jax.random.PRNGKey(0)
    k_src, k_tgt = jax.random.split(key)
    src_seq = jax.random.randint(k_src, (B, S), 0, V, dtype=jnp.int32)
    tgt_seq = jax.random.randint(k_tgt, (B, T), 0, V, dtype=jnp.int32)

    model = NMTModelPallas(vocab=V, hidden=H, key=jax.random.PRNGKey(0))
    logp = model.forward(src_seq, tgt_seq)
    jax.block_until_ready(logp)
    assert logp.shape == (B, T, V)

    # sanity 1: rows are valid log-prob distributions
    row_sums = jnp.exp(logp).sum(-1)
    assert bool(jnp.allclose(row_sums, 1.0, atol=1e-4))

    # sanity 2: matches a pure-JAX reference (same bf16 matmul / f32 softmax)
    ctx = jnp.take(model.src_emb, src_seq, axis=0).mean(axis=1)
    h_ref = (jnp.take(model.tgt_emb, tgt_seq, axis=0) + ctx[:, None, :])
    h_ref = h_ref.reshape(B * T, H).astype(jnp.bfloat16)
    ref_logits = jnp.dot(h_ref, model.w_out,
                         preferred_element_type=jnp.float32) + model.b_out
    ref = jax.nn.log_softmax(ref_logits, axis=-1).reshape(B, T, V)
    assert bool(jnp.allclose(logp, ref, atol=5e-3, rtol=5e-3))

    print("KERNEL_OK")
</pallas_src>

<mosaic_0001>
module attributes {stable_mosaic.version = 11 : i64} {
  func.func @_logprob_kernel(%arg0: i32, %arg1: i32, %arg2: i32, %arg3: memref<16x32xbf16, #tpu.memory_space<vmem>>, %arg4: memref<32x128xbf16, #tpu.memory_space<vmem>>, %arg5: memref<1x128xf32, #tpu.memory_space<vmem>>, %arg6: memref<16x128xf32, #tpu.memory_space<vmem>>, %arg7: memref<16x1xf32, #tpu.memory_space<vmem>>, %arg8: memref<16x1xf32, #tpu.memory_space<vmem>>) attributes {dimension_semantics = [#tpu.dimension_semantics<parallel>, #tpu.dimension_semantics<arbitrary>, #tpu.dimension_semantics<arbitrary>], iteration_bounds = array<i64: 1, 2, 1>, scalar_prefetch = 0 : i64, scratch_operands = 2 : i64, tpu.core_type = #tpu.core_type<tc>, window_params = [{transform_indices = @transform_0, window_bounds = array<i64: 16, 32>}, {transform_indices = @transform_1, window_bounds = array<i64: 32, 128>}, {transform_indices = @transform_2, window_bounds = array<i64: 1, 128>}, {transform_indices = @transform_3, window_bounds = array<i64: 16, 128>}]} {
    %c0 = arith.constant 0 : index
    %c0_0 = arith.constant 0 : index
    %0 = vector.load %arg3[%c0, %c0_0] : memref<16x32xbf16, #tpu.memory_space<vmem>>, vector<16x32xbf16>
    %c0_1 = arith.constant 0 : index
    %c0_2 = arith.constant 0 : index
    %1 = vector.load %arg4[%c0_1, %c0_2] : memref<32x128xbf16, #tpu.memory_space<vmem>>, vector<32x128xbf16>
    %cst = arith.constant dense<0.000000e+00> : vector<16x128xf32>
    %2 = tpu.matmul %0, %1, %cst {dimension_numbers = #tpu.dot_dimension_numbers<[1], [0], [0], [1], [0, 0, 1, 1], [], []>} : vector<16x32xbf16>, vector<32x128xbf16>, vector<16x128xf32> -> vector<16x128xf32>
    %c0_3 = arith.constant 0 : index
    %c0_4 = arith.constant 0 : index
    %3 = vector.load %arg5[%c0_3, %c0_4] : memref<1x128xf32, #tpu.memory_space<vmem>>, vector<1x128xf32>
    %4 = vector.broadcast %3 : vector<1x128xf32> to vector<16x128xf32>
    %5 = arith.addf %2, %4 : vector<16x128xf32>
    %c0_i32 = arith.constant 0 : i32
    %6 = arith.cmpi eq, %arg1, %c0_i32 : i32
    %c0_i32_5 = arith.constant 0 : i32
    %7 = arith.cmpi eq, %arg2, %c0_i32_5 : i32
    %8 = arith.andi %6, %7 : i1
    %9 = arith.extui %8 : i1 to i32
    %c0_i32_6 = arith.constant 0 : i32
    %10 = arith.cmpi ne, %9, %c0_i32_6 : i32
    scf.if %10 {
      %cst_10 = arith.constant 0xFF800000 : f32
      %17 = vector.broadcast %cst_10 : f32 to vector<16x1xf32>
      %c0_11 = arith.constant 0 : index
      %c0_12 = arith.constant 0 : index
      %18 = vector.load %arg7[%c0_11, %c0_12] : memref<16x1xf32, #tpu.memory_space<vmem>>, vector<16x1xf32>
      tpu.vector_store %arg7[%c0_11, %c0_12], %17 {strides = array<i32>} : memref<16x1xf32, #tpu.memory_space<vmem>>, vector<16x1xf32>,
      %cst_13 = arith.constant 0.000000e+00 : f32
      %19 = vector.broadcast %cst_13 : f32 to vector<16x1xf32>
      %c0_14 = arith.constant 0 : index
      %c0_15 = arith.constant 0 : index
      %20 = vector.load %arg8[%c0_14, %c0_15] : memref<16x1xf32, #tpu.memory_space<vmem>>, vector<16x1xf32>
      tpu.vector_store %arg8[%c0_14, %c0_15], %19 {strides = array<i32>} : memref<16x1xf32, #tpu.memory_space<vmem>>, vector<16x1xf32>,
    } else {
    }
    %c0_i32_7 = arith.constant 0 : i32
    %11 = arith.cmpi eq, %arg1, %c0_i32_7 : i32
    %12 = arith.extui %11 : i1 to i32
    %c0_i32_8 = arith.constant 0 : i32
    %13 = arith.cmpi ne, %12, %c0_i32_8 : i32
    scf.if %13 {
      %c0_10 = arith.constant 0 : index
      %c0_11 = arith.constant 0 : index
      %17 = vector.load %arg7[%c0_10, %c0_11] : memref<16x1xf32, #tpu.memory_space<vmem>>, vector<16x1xf32>
      %cst_12 = arith.constant dense<0xFF800000> : vector<16xf32>
      %18 = vector.multi_reduction <maximumf>, %5, %cst_12 [1] : vector<16x128xf32> to vector<16xf32>
      %19 = vector.shape_cast %18 : vector<16xf32> to vector<16x1xf32>
      %20 = arith.maximumf %17, %19 : vector<16x1xf32>
      %c0_13 = arith.constant 0 : index
      %c0_14 = arith.constant 0 : index
      %21 = vector.load %arg8[%c0_13, %c0_14] : memref<16x1xf32, #tpu.memory_space<vmem>>, vector<16x1xf32>
      %22 = arith.subf %17, %20 : vector<16x1xf32>
      %23 = math.exp %22 : vector<16x1xf32>
      %24 = arith.mulf %21, %23 : vector<16x1xf32>
      %25 = vector.broadcast %20 : vector<16x1xf32> to vector<16x128xf32>
      %26 = arith.subf %5, %25 : vector<16x128xf32>
      %27 = math.exp %26 : vector<16x128xf32>
      %cst_15 = arith.constant dense<0.000000e+00> : vector<16xf32>
      %28 = vector.multi_reduction <add>, %27, %cst_15 [1] : vector<16x128xf32> to vector<16xf32>
      %29 = vector.shape_cast %28 : vector<16xf32> to vector<16x1xf32>
      %30 = arith.addf %24, %29 : vector<16x1xf32>
      %c0_16 = arith.constant 0 : index
      %c0_17 = arith.constant 0 : index
      %31 = vector.load %arg8[%c0_16, %c0_17] : memref<16x1xf32, #tpu.memory_space<vmem>>, vector<16x1xf32>
      tpu.vector_store %arg8[%c0_16, %c0_17], %30 {strides = array<i32>} : memref<16x1xf32, #tpu.memory_space<vmem>>, vector<16x1xf32>,
      %c0_18 = arith.constant 0 : index
      %c0_19 = arith.constant 0 : index
      %32 = vector.load %arg7[%c0_18, %c0_19] : memref<16x1xf32, #tpu.memory_space<vmem>>, vector<16x1xf32>
      tpu.vector_store %arg7[%c0_18, %c0_19], %20 {strides = array<i32>} : memref<16x1xf32, #tpu.memory_space<vmem>>, vector<16x1xf32>,
    } else {
    }
    %c1_i32 = arith.constant 1 : i32
    %14 = arith.cmpi eq, %arg1, %c1_i32 : i32
    %15 = arith.extui %14 : i1 to i32
    %c0_i32_9 = arith.constant 0 : i32
    %16 = arith.cmpi ne, %15, %c0_i32_9 : i32
    scf.if %16 {
      %c0_10 = arith.constant 0 : index
      %c0_11 = arith.constant 0 : index
      %17 = vector.load %arg7[%c0_10, %c0_11] : memref<16x1xf32, #tpu.memory_space<vmem>>, vector<16x1xf32>
      %c0_12 = arith.constant 0 : index
      %c0_13 = arith.constant 0 : index
      %18 = vector.load %arg8[%c0_12, %c0_13] : memref<16x1xf32, #tpu.memory_space<vmem>>, vector<16x1xf32>
      %19 = math.log %18 : vector<16x1xf32>
      %20 = arith.addf %17, %19 : vector<16x1xf32>
      %21 = vector.broadcast %20 : vector<16x1xf32> to vector<16x128xf32>
      %22 = arith.subf %5, %21 : vector<16x128xf32>
      %c0_14 = arith.constant 0 : index
      %c0_15 = arith.constant 0 : index
      %23 = vector.load %arg6[%c0_14, %c0_15] : memref<16x128xf32, #tpu.memory_space<vmem>>, vector<16x128xf32>
      tpu.vector_store %arg6[%c0_14, %c0_15], %22 {strides = array<i32>} : memref<16x128xf32, #tpu.memory_space<vmem>>, vector<16x128xf32>,
    } else {
    }
    return
  }
  func.func @transform_0(%arg0: i32, %arg1: i32, %arg2: i32) -> (i32, i32) {
    %c0_i32 = arith.constant 0 : i32
    %c0_i32_0 = arith.constant 0 : i32
    return %arg0, %c0_i32 : i32, i32
  }
  func.func @transform_1(%arg0: i32, %arg1: i32, %arg2: i32) -> (i32, i32) {
    %c0_i32 = arith.constant 0 : i32
    %c0_i32_0 = arith.constant 0 : i32
    return %c0_i32, %arg2 : i32, i32
  }
  func.func @transform_2(%arg0: i32, %arg1: i32, %arg2: i32) -> (i32, i32) {
    %c0_i32 = arith.constant 0 : i32
    %c0_i32_0 = arith.constant 0 : i32
    return %c0_i32, %arg2 : i32, i32
  }
  func.func @transform_3(%arg0: i32, %arg1: i32, %arg2: i32) -> (i32, i32) {
    %0 = arith.muli %arg2, %arg1 : i32
    %c0_i32 = arith.constant 0 : i32
    return %arg0, %0 : i32, i32
  }
}

</mosaic_0001>

<bundles_post_ra>
// kernel: tpu_custom_call.1
= control target key start
LH: loop header
LB: loop body
LE: loop exit
PB: predicated region body
PF: predicated region fallthrough
CT: control target
= control target key end

     0   :  { %8 = vsyncpa [#allocation5], 0  ;;  %s938_s0 = inlined_call_operand.hbm [shape: bf16[16,32], index: 0, kind: input, shape index: {}]   ;;  %s939_s1 = inlined_call_operand.hbm [shape: bf16[32,128], index: 1, kind: input, shape index: {}]   ;;  %s940_s2 = inlined_call_operand.vmem [shape: f32[1,128], index: 2, kind: input, shape index: {}]   ;;  %s941_s3 = inlined_call_operand.hbm [shape: f32[16,128], index: 3, kind: output, shape index: {}]  }
   0x1   :  { %9 = vsyncpa [#allocation8], 0 }
   0x2   :  { %10 = vsyncpa [#allocation6], 0 }
   0x3   :  { %12 = vsyncpa [#allocation6 + $0x1], 0  ;;  %s783_s12 = smov 0   ;;  %s785_s13 = smov 0  }
   0x4   :  { %s787_s14 = smov 0  }
   0x5 LB: > { %s514_s15 = sadd.s32 4294967295, %s748_s14   ;;  %s515_s16 = sadd.s32 4294967294, %s748_s14   ;;  %s748_s14 = sphi %s787_s14, %s18_s14   ;;  %s744_s13 = sphi %s785_s13, %s952_s13   ;;  %s740_s12 = sphi %s783_s12, %s951_s12  }
   0x6   : > { %s33_s17 = sadd.s32 1, %s744_s13  ;;  %p516_p0 = scmp.ge.s32.totalorder %s748_s14, 1 }
   0x7   : > { %p35_p1 = scmp.ge.s32.totalorder %s33_s17, 2  ;;  %p150_p2 = scmp.lt.s32.totalorder %s748_s14, 3 }
   0x8   : > { %p805_p3 = scmp.eq.s32.totalorder %s514_s15, 0  ;;  %s750_s20 = smov [#allocation4]  }
   0x9   : > { %s954_s17 = smov (%p35_p1, %s33_s17), 0  ;;  %p811_p4 = pnand %p516_p0, %p150_p2 }
   0xa   : > { %s945_s18 = scalar_select %p805_p3, 1, 0 }
   0xb   : > { %s946_s19 = scalar_select %p811_p4, 1, 0 }
   0xc   : > { %s165_s21 = sshll.u32 %s750_s20, 4  ;;  %p559_p5 = pneg %p811_p4  ;;  %s166_s21 = int_to_ptr.vmem [resolvable:$true] %s165_s21 }
   0xd   : > { %s751_s23 = smov [#allocation7]   ;;  %s632_s27 = scalar_lea.hbm %s938_s0, 128 }
   0xe   : > { %p819_p6 = pnand %p805_p3, %p559_p5  ;;  %s180_s24 = sshll.u32 %s751_s23, 4  ;;  %s823_s24 = int_to_ptr.vmem [resolvable:$true] %s180_s24 }
   0xf   : > { %p633_p7 = scmp.ne.s32.totalorder %s938_s0, %s632_s27  ;;  %p639_p11 = scmp.lt.u32.totalorder %s632_s27, %s938_s0 }
  0x10   : > { %p634_p8 = pneg %p819_p6 }
  0x12   : > { %p635_p9 = pnand %p634_p8, %p633_p7 }
  0x14   : > { %p636_p10 = pneg %p635_p9 }
  0x16   : > { %p641_p12 = pnand %p639_p11, %p636_p10 }
  0x18   : > { %644 = shalt.err (!%p641_p12)
}
  0x19   : > { %s645_s5 = scalar_lea.vmem %s166_s21, 128  ;;  %p653_p2 = scmp.lt.s32.totalorder %s166_s21, %s166_s21 }
  0x1a   : > { %p646_p13 = scmp.ne.s32.totalorder %s166_s21, %s645_s5  ;;  %p654_p5 = scmp.lt.s32.totalorder %s645_s5, %s645_s5 }
  0x1c   : > { %p648_p0 = pnand %p646_p13, %p634_p8  ;;  %p655_p3 = por %p654_p5, %p653_p2 }
  0x1e   : > { %p649_p1 = pneg %p648_p0 }
  0x20   : > { %p656_p4 = pnand %p655_p3, %p649_p1 }
  0x22   : > { %659 = shalt.err (!%p656_p4)
}
  0x23   : > { %s752_s6 = smov 64   ;;  %s753_s7 = smov 4  }
  0x24   : > { %562 = dma.hbm_to_vmem [thread:$0]  (!%p819_p6), %s938_s0, 128, %s166_s21, [#allocation5], %s752_s6, %s752_s6, %s753_s7  }
  0x25   : > { %s660_s20 = scalar_lea.hbm %s939_s1, 256 }
  0x26   : > { %p661_p7 = scmp.ne.s32.totalorder %s939_s1, %s660_s20  ;;  %p667_p9 = scmp.lt.u32.totalorder %s660_s20, %s939_s1 }
  0x28   : > { %p663_p3 = pnand %p661_p7, %p634_p8 }
  0x2a   : > { %p664_p4 = pneg %p663_p3 }
  0x2c   : > { %p669_p10 = pnand %p667_p9, %p664_p4 }
  0x2e   : > { %672 = shalt.err (!%p669_p10)
}
  0x2f   : > { %s673_s21 = scalar_lea.vmem %s823_s24, 256  ;;  %p681_p0 = scmp.lt.s32.totalorder %s823_s24, %s823_s24 }
  0x30   : > { %p674_p11 = scmp.ne.s32.totalorder %s823_s24, %s673_s21  ;;  %p682_p1 = scmp.lt.s32.totalorder %s673_s21, %s673_s21 }
  0x32   : > { %p676_p12 = pnand %p674_p11, %p634_p8  ;;  %p683_p2 = por %p682_p1, %p681_p0 }
  0x34   : > { %p677_p13 = pneg %p676_p12 }
  0x36   : > { %p684_p5 = pnand %p683_p2, %p677_p13 }
  0x38   : > { %687 = shalt.err (!%p684_p5)
}
  0x39   : > { %565 = dma.hbm_to_vmem [thread:$0]  (!%p819_p6), %s939_s1, 256, %s823_s24, [#allocation8], %s752_s6, %s752_s6, %s753_s7  }
  0x3a   : > { %p948_p7 = scmp.ne.s32.totalorder %s946_s19, 0 }
  0x3b   : > { %p949_p3 = scmp.ne.s32.totalorder (!%p948_p7), %s945_s18, 0 }
  0x3c   : > { %202 = sbr.rel (%p948_p7) target bundleno = 908 (0x38c), region = 32 }
  0x43   : > { %727 = dma.done.wait (%p949_p3), [#allocation5], 128  }
  0x44   : > { %729 = vsyncadd (%p949_p3), [#allocation5], 4294967168 }
  0x45   : > { %731 = dma.done.wait (%p949_p3), [#allocation8], 256  }
  0x46   : > { %733 = vsyncadd (%p949_p3), [#allocation8], 4294967040  ;;  %v754_v0 = vmov 0.0   ;;  %vm755_vm0 = vmmov 0   ;;  %v614_v1 = vld [vmem:[#allocation7] sm:$0xff]   ;;  %v615_v2 = vld [vmem:[#allocation7 + $0x8] sm:$0xff]  }
  0x47   : > { %539 = vmatprep.subr.bf16.mxu0 %v754_v0  ;;  %543 = vmatprep.mubr.msk.bf16.mxu0 %vm755_vm0, %v754_v0  ;;  %v616_v3 = vld [vmem:[#allocation4] sm:$0xff]   ;;  %vm265_vm1 = vcmask 261120   ;;  %p310_p6 = scmp.eq.s32.totalorder %s740_s12, 0 }
  0x48   : > { %540 = vmatpush3.bf16.msra.mxu0 %v614_v1  ;;  %v523_v4 = vld [vmem:[%s940_s2] ss:$0 sm:$0xff]  ;;  %vm316_vm2 = vcmask (%p310_p6), 7168   ;;  %v756_v11 = vmov (%p310_p6), -inf   ;;  %v757_v12 = vmov (%p310_p6), 0.0  }
  0x49   : > { %541 = vmatprep.subr.bf16.mxu0 %v754_v0  ;;  %317 = vst.msk [vmem:[#allocation2] sm:$0xff] (%p310_p6), %vm316_vm2, %v756_v11  ;;  %318 = vst.msk [vmem:[#allocation2 + $0x8] sm:$0xff] (%p310_p6), %vm316_vm2, %v756_v11 }
  0x4a   : > { %319 = vst.msk [vmem:[#allocation3] sm:$0xff] (%p310_p6), %vm316_vm2, %v757_v12  ;;  %320 = vst.msk [vmem:[#allocation3 + $0x8] sm:$0xff] (%p310_p6), %vm316_vm2, %v757_v12 }
  0x4c   : > { %542 = vmatpush3.bf16.msra.mxu0 %v615_v2 }
  0x4f   : > { %544 = vmatmul.mubr.msk.bf16.vlgmr.msra.gmra.mrb[0].mxu0 %vm265_vm1, %v616_v3 }
 0x11f   : > { %315 = sbr.rel (!%p310_p6) target bundleno = 294 (0x126), region = 44 }
 0x122   : > { %v303_v5 = vpop.f32.mrb[0].mxu0 }
 0x123   : > { %v886_v6 = vadd.f32 %v523_v4, %v303_v5  ;;  %v545_v7 = vpop.f32.mrb[1].mxu0 }
 0x124   : > { %v306_v8 = vpop.f32.mrb[2].mxu0 }
 0x125   : > { %v888_v9 = vadd.f32 %v523_v4, %v306_v8  ;;  %v546_v10 = vpop.f32.mrb[3].mxu0 }
 0x126 PF: > { %p529_p8 = scmp.ne.s32.totalorder %s740_s12, 0 }
 0x127   : > { %326 = vmax.xlane.f32.xlu0 (!%p529_p8), %v886_v6  ;;  %v758_v13 = vmov (!%p529_p8), 0   ;;  %v324_v14 = vld [vmem:[#allocation2] sm:$0xff] (!%p529_p8)  ;;  %vm364_vm3 = vcmask (!%p529_p8), 7168   ;;  %v325_v17 = vld [vmem:[#allocation2 + $0x8] sm:$0xff] (!%p529_p8)  ;;  %v332_v33 = vld [vmem:[#allocation3] sm:$0xff] (!%p529_p8) }
 0x128   : > { %323 = sbr.rel (%p529_p8) target bundleno = 731 (0x2db), region = 48  ;;  %617 = vset.pattern.permute.xlu1 (!%p529_p8), %v758_v13  ;;  %618 = vset.pattern.permute.xlu0 (!%p529_p8), %v758_v13  ;;  %v333_v37 = vld [vmem:[#allocation3 + $0x8] sm:$0xff] (!%p529_p8) }
 0x12b   : > { %328 = vmax.xlane.f32.xlu0 (!%p529_p8), %v888_v9 }
 0x1b4   : > { %v327_v15 = vpop.xlane.xlu0 %326 }
 0x1b5   : > { %v330_v16 = vmax.f32 %v324_v14, %v327_v15 }
 0x1b7   : > { %v334_v18 = vsub.f32 %v324_v14, %v330_v16  ;;  %367 = vst.msk [vmem:[#allocation2] sm:$0xff] %vm364_vm3, %v330_v16  ;;  %344 = vperm.xlu1 %617, %v330_v16  }
 0x1b8   : > { %v329_v19 = vpop.xlane.xlu0 %328 }
 0x1b9   : > { %v331_v20 = vmax.f32 %v325_v17, %v329_v19  ;;  %v336_v30 = vmul.f32 1.442695, %v334_v18 }
 0x1bb   : > { %v335_v21 = vsub.f32 %v325_v17, %v331_v20  ;;  %368 = vst.msk [vmem:[#allocation2 + $0x8] sm:$0xff] %vm364_vm3, %v331_v20  ;;  %349 = vperm.xlu1 %617, %v331_v20  }
 0x1bd   : > { %v338_v31 = vmul.f32 1.442695, %v335_v21 }
 0x236   : > { %v345_v22 = vpop.permute.xlu1 %344 }
 0x237   : > { %v352_v23 = vsub.f32 %v886_v6, %v345_v22 }
 0x239   : > { %v354_v24 = vmul.f32 1.442695, %v352_v23 }
 0x23a   : > { %v350_v25 = vpop.permute.xlu1 %349 }
 0x23b   : > { %619 = vpow2.f32 %v354_v24  ;;  %v353_v26 = vsub.f32 %v888_v9, %v350_v25 }
 0x23d   : > { %v356_v27 = vmul.f32 1.442695, %v353_v26 }
 0x23f   : > { %621 = vpow2.f32 %v356_v27 }
 0x240   : > { %623 = vpow2.f32 %v336_v30 }
 0x241   : > { %625 = vpow2.f32 %v338_v31 }
 0x245   : > { %v620_v28 = vpop.eup %619 }
 0x246   : > { %358 = vadd.xlane.f32.xlu0 %v620_v28 }
 0x249   : > { %v622_v29 = vpop.eup %621 }
 0x24a   : > { %360 = vadd.xlane.f32.xlu1 %v622_v29  ;;  %v624_v32 = vpop.eup %623 }
 0x24b   : > { %v340_v34 = vmul.f32 %v624_v32, %v332_v33  ;;  %v626_v35 = vpop.eup %625 }
 0x24c   : > { %v341_v39 = vmul.f32 %v626_v35, %v333_v37 }
 0x2d3   : > { %v359_v36 = vpop.xlane.xlu0 %358 }
 0x2d4   : > { %v362_v38 = vadd.f32 %v359_v36, %v340_v34 }
 0x2d6   : > { %365 = vst.msk [vmem:[#allocation3] sm:$0xff] %vm364_vm3, %v362_v38 }
 0x2d7   : > { %v361_v40 = vpop.xlane.xlu1 %360 }
 0x2d8   : > { %v363_v41 = vadd.f32 %v361_v40, %v341_v39 }
 0x2da   : > { %366 = vst.msk [vmem:[#allocation3 + $0x8] sm:$0xff] %vm364_vm3, %v363_v41 }
 0x2db PF: > { %p530_p4 = scmp.ne.s32.totalorder %s740_s12, 1 }
 0x2dc   : > { %v759_v43 = vmov (!%p530_p4), 0   ;;  %v373_v46 = vld [vmem:[#allocation2] sm:$0xff] (!%p530_p4)  ;;  %v374_v49 = vld [vmem:[#allocation2 + $0x8] sm:$0xff] (!%p530_p4) }
 0x2dd   : > { %372 = sbr.rel (%p530_p4) target bundleno = 884 (0x374), region = 52  ;;  %v375_v42 = vld [vmem:[#allocation3] sm:$0xff] (!%p530_p4)  ;;  %627 = vset.pattern.permute.xlu0 (!%p530_p4), %v759_v43 }
 0x2de   : > { %628 = vlog2.f32 (!%p530_p4), %v375_v42 }
 0x2e1   : > { %v376_v44 = vld [vmem:[#allocation3 + $0x8] sm:$0xff] (!%p530_p4) }
 0x2e2   : > { %630 = vlog2.f32 (!%p530_p4), %v376_v44 }
 0x2e8   : > { %v629_v45 = vpop.eup %628 }
 0x2e9   : > { %v378_v48 = vmul.f32 0.6931472, %v629_v45 }
 0x2eb   : > { %v381_v51 = vadd.f32 %v378_v48, %v373_v46 }
 0x2ec   : > { %v631_v47 = vpop.eup %630 }
 0x2ed   : > { %v380_v50 = vmul.f32 0.6931472, %v631_v47  ;;  %385 = vperm.xlu0 %627, %v381_v51  }
 0x2ef   : > { %v382_v52 = vadd.f32 %v380_v50, %v374_v49 }
 0x2f1   : > { %390 = vperm.xlu0 %627, %v382_v52  }
 0x36c   : > { %v386_v53 = vpop.permute.xlu0 %385 }
 0x36d   : > { %v393_v54 = vsub.f32 %v886_v6, %v386_v53 }
 0x36f   : > { %395 = vst [vmem:[#allocation9] sm:$0xff] %v393_v54 }
 0x370   : > { %v391_v55 = vpop.permute.xlu0 %390 }
 0x371   : > { %v394_v56 = vsub.f32 %v888_v9, %v391_v55 }
 0x373   : > { %396 = vst [vmem:[#allocation9 + $0x8] sm:$0xff] %v394_v56 }
 0x374 PF: > { %p904_p9 = scmp.eq.s32.totalorder %s514_s15, 1  ;;  %s760_s18 = smov [#allocation9]  }
 0x375   : > { %s413_s24 = sshll.u32 %s760_s18, 4  ;;  %s414_s24 = int_to_ptr.vmem [resolvable:$true] %s413_s24 }
 0x376   : > { %s688_s30 = scalar_lea.vmem %s414_s24, 256  ;;  %s694_s4 = scalar_lea.vmem %s414_s24, 512 }
 0x377   : > { %p689_p10 = scmp.ne.s32.totalorder %s414_s24, %s688_s30  ;;  %p695_p13 = scmp.lt.s32.totalorder %s414_s24, %s414_s24 }
 0x378   : > { %p696_p0 = scmp.lt.s32.totalorder %s694_s4, %s688_s30 }
 0x379   : > { %p690_p11 = pnand %p689_p10, %p904_p9 }
 0x37a   : > { %p697_p1 = por %p696_p0, %p695_p13 }
 0x37b   : > { %p691_p12 = pneg %p690_p11 }
 0x37d   : > { %p698_p2 = pnand %p697_p1, %p691_p12 }
 0x37f   : > { %701 = shalt.err (!%p698_p2)
}
 0x380   : > { %s702_s6 = scalar_lea.hbm %s941_s3, 256 }
 0x381   : > { %p703_p5 = scmp.ne.s32.totalorder %s941_s3, %s702_s6  ;;  %p708_p6 = scmp.lt.u32.totalorder %s702_s6, %s941_s3 }
 0x383   : > { %p704_p7 = pnand %p703_p5, %p904_p9 }
 0x385   : > { %p705_p3 = pneg %p704_p7 }
 0x387   : > { %p710_p8 = pnand %p708_p6, %p705_p3 }
 0x389   : > { %713 = shalt.err (!%p710_p8)
}
 0x38a   : > { %s761_s11 = smov 128   ;;  %s762_s20 = smov 8  }
 0x38b   : > { %556 = dma.vmem_to_hbm [thread:$0]  (%p904_p9), %s414_s24, 256, %s941_s3, [#allocation6], %s761_s11, %s761_s11, %s762_s20  }
 0x38c PF: > { %p575_p4 = scmp.ge.s32.totalorder %s748_s14, 2  ;;  %p576_p10 = scmp.eq.s32.totalorder %s515_s16, 1 }
 0x38e   : > { %p567_p11 = pnand %p576_p10, %p575_p4 }
 0x390   : > { %735 = dma.done.wait (!%p567_p11), [#allocation6], 256  }
 0x391   : > { %737 = vsyncadd (!%p567_p11), [#allocation6], 4294967040  ;;  %s18_s14 = sadd.s32 1, %s748_s14   ;;  %s951_s12 = smov %s744_s13 }
 0x392   : > { %p15_p12 = scmp.ge.s32.totalorder %s18_s14, 4   ;;  %s952_s13 = smov %s954_s17 }
 0x394   :  { %17 = sbr.rel (!%p15_p12) target bundleno = 5 (0x5), region = 90 }
 0x39b   :  { %434 = vsyncpa [#allocation5], 1 }
 0x39c   :  { %436 = vsyncpa [#allocation5 + $0x1], 1 }
 0x39d   :  { %437 = vsyncpa [#allocation8], 1 }
 0x39e   :  { %438 = vsyncpa [#allocation6], 1 }
 0x39f   :  { %440 = vsyncpa [#allocation6 + $0x1], 1 }

</bundles_post_ra>
